<compile_context>
chip_gen: v6e
topology: v6e:2x2x1
jax: 0.10.0
libtpu: 0.0.40
codegen_flags: <defaults>
</compile_context>

<pallas_src>
import functools

import jax
import jax.numpy as jnp
from jax.experimental import pallas as pl
from jax.experimental.pallas import tpu as pltpu


def _ffn_kernel(x_ref, w13_ref, w2_ref, o_ref, acc_ref, *, tn):
    # x_ref:  (tm, dim)          w13_ref: (dim, 2*tn) = [w1 slice | w3 slice]
    # w2_ref: (tn, dim)          o_ref:   (tm, dim)   acc_ref: (tm, dim) f32
    n = pl.program_id(1)

    @pl.when(n == 0)
    def _init():
        acc_ref[...] = jnp.zeros_like(acc_ref)

    x = x_ref[...]
    # Fused gate/up projection for this hidden slice; f32 accumulation on MXU.
    h = jnp.dot(x, w13_ref[...], preferred_element_type=jnp.float32)
    h1 = h[:, :tn]   # gate (lane-aligned static slice: tn % 128 == 0)
    h3 = h[:, tn:]   # up
    # SiLU(h1) * h3 in f32 (EUP sigmoid + VPU multiplies).
    g = (h1 * jax.nn.sigmoid(h1)) * h3
    # Partial down-projection; the hidden grid axis is the K reduction.
    acc_ref[...] += jnp.dot(
        g.astype(w2_ref.dtype), w2_ref[...], preferred_element_type=jnp.float32
    )

    @pl.when(n == pl.num_programs(1) - 1)
    def _finalize():
        o_ref[...] = acc_ref[...].astype(o_ref.dtype)


def _tpu_hw_info():
    """Returns (vmem_capacity_bytes, preferred_row_tile, dual_tensorcore_chip)."""
    kind = ""
    try:
        kind = jax.devices()[0].device_kind.lower()
    except Exception:
        pass
    vmem_cap = None
    try:
        vmem_cap = int(pltpu.get_tpu_info().vmem_capacity_bytes)
    except Exception:
        vmem_cap = None
    if vmem_cap is None or vmem_cap <= 0:
        # Conservative fallbacks: v7x has 64 MiB/TC, v5e/v6e have 128 MiB.
        if "v7" in kind:
            vmem_cap = 64 << 20
        elif kind.startswith("tpu"):
            vmem_cap = 128 << 20
        else:
            vmem_cap = 64 << 20
    # Row tile needed to make weight re-streaming compute-bound (bf16 AI ~ tm):
    #   v5e ~240 flops/B, v7x ~320, v6e ~650.
    if "v6" in kind:
        preferred_tm = 1024
    elif "v7" in kind:
        preferred_tm = 512
    else:  # v5e / unknown
        preferred_tm = 512
    # Chips where the "parallel" grid axis shards across 2 TensorCores.
    two_cores = any(tag in kind for tag in ("v7", "v4", "v5p"))
    return vmem_cap, preferred_tm, two_cores


def _divisor_tiles(total, quantum):
    """Divisors of `total` that are multiples of `quantum`, descending.
    Always includes `total` itself (a full-extent block is always legal)."""
    cands = {total}
    t = quantum
    while t <= total:
        if total % t == 0:
            cands.add(t)
        t += quantum
    return sorted(cands, reverse=True)


def _vmem_need(tm, tn, dim, x_itemsize, w_itemsize):
    """Estimated VMEM working set for one pipelined grid step."""
    streamed = (
        tm * dim * x_itemsize        # x block
        + dim * 2 * tn * w_itemsize  # fused [w1 | w3] block
        + tn * dim * w_itemsize      # w2 block
        + tm * dim * x_itemsize      # output block
    )
    acc = tm * dim * 4  # f32 accumulator scratch
    # Compiler-internal temporaries: h (tm, 2*tn) f32, g f32, g cast to w dtype.
    interm = tm * 2 * tn * 4 + tm * tn * 4 + tm * tn * w_itemsize
    return 2 * streamed + acc + interm + (2 << 20)  # double-buffering + slack


def _auto_tiles(M, dim, hidden, x_itemsize, w_itemsize, preferred_tm, vmem_budget,
                two_cores):
    row_q = 8 if x_itemsize >= 4 else 32 // x_itemsize          # sublane quantum
    tn_q = 256 if hidden % 256 == 0 else 128                    # full MXU N fill
    tm_cands = _divisor_tiles(M, row_q)
    tn_cands = _divisor_tiles(hidden, tn_q)

    tn = next((t for t in tn_cands if t <= 512), tn_cands[-1])
    tm_limit = preferred_tm
    if two_cores and any(t < M for t in tm_cands):
        # Keep >= 2 row tiles so both TensorCores get work on dual-TC chips.
        tm_limit = min(tm_limit, M // 2)
    tm = next((t for t in tm_cands if t <= tm_limit), tm_cands[-1])

    # Shrink until the working set fits the VMEM budget: tn first (not below
    # 256 where possible, to keep the MXU full), then tm, then tn further.
    tn_floor = 256 if hidden % 256 == 0 else tn_q
    while _vmem_need(tm, tn, dim, x_itemsize, w_itemsize) > vmem_budget:
        nxt_tn = next((t for t in tn_cands if t < tn and t >= tn_floor), None)
        if nxt_tn is not None:
            tn = nxt_tn
            continue
        nxt_tm = next((t for t in tm_cands if t < tm), None)
        if nxt_tm is not None:
            tm = nxt_tm
            continue
        nxt_tn = next((t for t in tn_cands if t < tn), None)
        if nxt_tn is not None:
            tn = nxt_tn
            continue
        break
    return tm, tn


@functools.partial(jax.jit, static_argnames=("tm", "tn"))
def feed_forward(x, w1, w3, w2, *, tm=None, tn=None):
    """x: [B, S, dim]; w1/w3: [dim, hidden]; w2: [hidden, dim] ([in, out] layout)."""
    B, S, dim = x.shape
    hidden = w1.shape[1]
    assert w1.shape == (dim, hidden) and w3.shape == (dim, hidden)
    assert w2.shape == (hidden, dim)
    # Keep everything lane-dense (avoids masked vst.msk partial stores).
    assert dim % 128 == 0, "dim must be a multiple of 128"
    assert hidden % 128 == 0, "hidden must be a multiple of 128"

    x2d = x.reshape(B * S, dim)
    M = B * S

    x_itemsize = jnp.dtype(x.dtype).itemsize
    w_itemsize = jnp.dtype(w1.dtype).itemsize

    vmem_cap, preferred_tm, two_cores = _tpu_hw_info()
    # Leave ~8 MiB headroom for Mosaic-internal scratch; never request > 100 MiB.
    vmem_budget = min(vmem_cap - (8 << 20), 100 << 20)

    auto_tm, auto_tn = _auto_tiles(
        M, dim, hidden, x_itemsize, w_itemsize, preferred_tm, vmem_budget, two_cores
    )
    if tm is None:
        tm = auto_tm
    if tn is None:
        tn = auto_tn
    assert M % tm == 0 and hidden % tn == 0
    assert tn % 128 == 0, "tn must be lane-aligned (multiple of 128)"

    nh = hidden // tn
    # Fuse the gate/up weights: each grid step streams one (dim, 2*tn) block whose
    # columns are [w1 tile n | w3 tile n].  In production, pre-fuse once outside
    # the per-call path; here it is a single cheap XLA concat per call.
    w13 = jnp.concatenate(
        [w1.reshape(dim, nh, tn), w3.reshape(dim, nh, tn)], axis=2
    ).reshape(dim, 2 * hidden)

    need = _vmem_need(tm, tn, dim, x_itemsize, w_itemsize)
    vmem_limit = int(min(max(need + (2 << 20), 16 << 20), max(vmem_budget, 16 << 20)))

    n_row_tiles = M // tm
    cost = pl.CostEstimate(
        flops=6 * M * dim * hidden,
        transcendentals=M * hidden,
        bytes_accessed=int(
            (x2d.size + M * dim) * x_itemsize
            # Weights are re-streamed once per row tile.
            + (w13.size + w2.size) * w_itemsize * n_row_tiles
        ),
    )

    # Note: x/out block indices are invariant over the inner n axis; a shallower
    # pipeline (pl.Buffered(1)) on those specs would free a little more VMEM.
    out2d = pl.pallas_call(
        functools.partial(_ffn_kernel, tn=tn),
        out_shape=jax.ShapeDtypeStruct((M, dim), x.dtype),
        grid_spec=pltpu.PrefetchScalarGridSpec(
            num_scalar_prefetch=0,
            grid=(n_row_tiles, nh),
            in_specs=[
                pl.BlockSpec((tm, dim), lambda i, n: (i, 0)),      # x rows (n-invariant)
                pl.BlockSpec((dim, 2 * tn), lambda i, n: (0, n)),  # fused [w1|w3] slice
                pl.BlockSpec((tn, dim), lambda i, n: (n, 0)),      # w2 hidden slice
            ],
            out_specs=pl.BlockSpec((tm, dim), lambda i, n: (i, 0)),
            scratch_shapes=[pltpu.VMEM((tm, dim), jnp.float32)],
        ),
        compiler_params=pltpu.CompilerParams(
            dimension_semantics=("parallel", "arbitrary"),
            vmem_limit_bytes=vmem_limit,
        ),
        cost_estimate=cost,
    )(x2d, w13, w2)
    return out2d.reshape(B, S, dim)


def _make_params(key, dim, hidden_dim_arg, multiple_of, dtype=jnp.float32):
    # Same hidden_dim derivation as the PyTorch module's __init__.
    hidden = int(2 * hidden_dim_arg / 3)
    hidden = multiple_of * ((hidden + multiple_of - 1) // multiple_of)
    k1, k2, k3 = jax.random.split(key, 3)
    scale_in = 1.0 / jnp.sqrt(dim)
    scale_hid = 1.0 / jnp.sqrt(hidden)
    # Stored as [in, out] (transpose of nn.Linear's [out, in]).
    w1 = jax.random.uniform(k1, (dim, hidden), dtype, -scale_in, scale_in)
    w3 = jax.random.uniform(k3, (dim, hidden), dtype, -scale_in, scale_in)
    w2 = jax.random.uniform(k2, (hidden, dim), dtype, -scale_hid, scale_hid)
    return w1, w3, w2, hidden


if __name__ == "__main__":
    key = jax.random.PRNGKey(0)
    kx, kp = jax.random.split(key)

    batch, seq = 2, 8
    dim, hidden_dim_arg, multiple_of = 128, 512, 128  # -> hidden = 384

    w1, w3, w2, hidden = _make_params(kp, dim, hidden_dim_arg, multiple_of)
    x = jax.random.normal(kx, (batch, seq, dim), jnp.float32)

    # Pure-JAX reference of the SwiGLU forward.
    h1 = x @ w1
    h3 = x @ w3
    ref = ((h1 * jax.nn.sigmoid(h1)) * h3) @ w2

    # Default (auto-tuned) tiles.
    out = jax.block_until_ready(feed_forward(x, w1, w3, w2))
    assert out.shape == (batch, seq, dim)
    assert jnp.allclose(out, ref, atol=1e-4, rtol=1e-4), "f32 mismatch vs reference"

    # Force multiple hidden steps and multiple row tiles to exercise the
    # accumulator init/finalize path and the parallel row axis.
    out_tiled = jax.block_until_ready(feed_forward(x, w1, w3, w2, tm=8, tn=128))
    assert jnp.allclose(out_tiled, ref, atol=1e-4, rtol=1e-4), "tiled mismatch"

    # bf16 weights/activations path (f32 MXU accumulation), looser tolerance.
    xb = x.astype(jnp.bfloat16)
    w1b, w3b, w2b = (w.astype(jnp.bfloat16) for w in (w1, w3, w2))
    out_bf16 = jax.block_until_ready(feed_forward(xb, w1b, w3b, w2b, tn=128))
    assert jnp.allclose(
        out_bf16.astype(jnp.float32), ref, atol=5e-2, rtol=5e-2
    ), "bf16 mismatch vs reference"

    print("KERNEL_OK")
</pallas_src>

<mosaic_0001>
module attributes {stable_mosaic.version = 11 : i64} {
  func.func @_ffn_kernel(%arg0: i32, %arg1: i32, %arg2: memref<16x128xf32, #tpu.memory_space<vmem>>, %arg3: memref<128x768xf32, #tpu.memory_space<vmem>>, %arg4: memref<384x128xf32, #tpu.memory_space<vmem>>, %arg5: memref<16x128xf32, #tpu.memory_space<vmem>>, %arg6: memref<16x128xf32, #tpu.memory_space<vmem>>) attributes {dimension_semantics = [#tpu.dimension_semantics<parallel>, #tpu.dimension_semantics<arbitrary>], iteration_bounds = array<i64: 1, 1>, scalar_prefetch = 0 : i64, scratch_operands = 1 : i64, tpu.core_type = #tpu.core_type<tc>, window_params = [{transform_indices = @transform_0, window_bounds = array<i64: 16, 128>}, {transform_indices = @transform_1, window_bounds = array<i64: 128, 768>}, {transform_indices = @transform_2, window_bounds = array<i64: 384, 128>}, {transform_indices = @transform_3, window_bounds = array<i64: 16, 128>}]} {
    %c0_i32 = arith.constant 0 : i32
    %0 = arith.cmpi eq, %arg1, %c0_i32 : i32
    %1 = arith.extui %0 : i1 to i32
    %c0_i32_0 = arith.constant 0 : i32
    %2 = arith.cmpi ne, %1, %c0_i32_0 : i32
    scf.if %2 {
      %cst_14 = arith.constant 0.000000e+00 : f32
      %23 = vector.broadcast %cst_14 : f32 to vector<16x128xf32>
      %c0_15 = arith.constant 0 : index
      %c0_16 = arith.constant 0 : index
      %24 = vector.load %arg6[%c0_15, %c0_16] : memref<16x128xf32, #tpu.memory_space<vmem>>, vector<16x128xf32>
      tpu.vector_store %arg6[%c0_15, %c0_16], %23 {strides = array<i32>} : memref<16x128xf32, #tpu.memory_space<vmem>>, vector<16x128xf32>,
    } else {
    }
    %c0 = arith.constant 0 : index
    %c0_1 = arith.constant 0 : index
    %3 = vector.load %arg2[%c0, %c0_1] : memref<16x128xf32, #tpu.memory_space<vmem>>, vector<16x128xf32>
    %c0_2 = arith.constant 0 : index
    %c0_3 = arith.constant 0 : index
    %4 = vector.load %arg3[%c0_2, %c0_3] : memref<128x768xf32, #tpu.memory_space<vmem>>, vector<128x768xf32>
    %cst = arith.constant dense<0.000000e+00> : vector<16x768xf32>
    %5 = tpu.matmul %3, %4, %cst {dimension_numbers = #tpu.dot_dimension_numbers<[1], [0], [0], [1], [0, 0, 1, 1], [], []>} : vector<16x128xf32>, vector<128x768xf32>, vector<16x768xf32> -> vector<16x768xf32>
    %6 = vector.extract_strided_slice %5 {offsets = [0, 0], sizes = [16, 384], strides = [1, 1]} : vector<16x768xf32> to vector<16x384xf32>
    %7 = vector.extract_strided_slice %5 {offsets = [0, 384], sizes = [16, 384], strides = [1, 1]} : vector<16x768xf32> to vector<16x384xf32>
    %8 = arith.negf %6 : vector<16x384xf32>
    %9 = math.exp %8 : vector<16x384xf32>
    %cst_4 = arith.constant 1.000000e+00 : f32
    %10 = vector.broadcast %cst_4 : f32 to vector<16x384xf32>
    %11 = arith.addf %10, %9 : vector<16x384xf32>
    %12 = arith.divf %10, %11 : vector<16x384xf32>
    %13 = arith.mulf %6, %12 : vector<16x384xf32>
    %14 = arith.mulf %13, %7 : vector<16x384xf32>
    %c0_5 = arith.constant 0 : index
    %c0_6 = arith.constant 0 : index
    %15 = vector.load %arg6[%c0_5, %c0_6] : memref<16x128xf32, #tpu.memory_space<vmem>>, vector<16x128xf32>
    %c0_7 = arith.constant 0 : index
    %c0_8 = arith.constant 0 : index
    %16 = vector.load %arg4[%c0_7, %c0_8] : memref<384x128xf32, #tpu.memory_space<vmem>>, vector<384x128xf32>
    %cst_9 = arith.constant dense<0.000000e+00> : vector<16x128xf32>
    %17 = tpu.matmul %14, %16, %cst_9 {dimension_numbers = #tpu.dot_dimension_numbers<[1], [0], [0], [1], [0, 0, 1, 1], [], []>} : vector<16x384xf32>, vector<384x128xf32>, vector<16x128xf32> -> vector<16x128xf32>
    %18 = arith.addf %15, %17 : vector<16x128xf32>
    %c0_10 = arith.constant 0 : index
    %c0_11 = arith.constant 0 : index
    %19 = vector.load %arg6[%c0_10, %c0_11] : memref<16x128xf32, #tpu.memory_space<vmem>>, vector<16x128xf32>
    tpu.vector_store %arg6[%c0_10, %c0_11], %18 {strides = array<i32>} : memref<16x128xf32, #tpu.memory_space<vmem>>, vector<16x128xf32>,
    %c0_i32_12 = arith.constant 0 : i32
    %20 = arith.cmpi eq, %arg1, %c0_i32_12 : i32
    %21 = arith.extui %20 : i1 to i32
    %c0_i32_13 = arith.constant 0 : i32
    %22 = arith.cmpi ne, %21, %c0_i32_13 : i32
    scf.if %22 {
      %c0_14 = arith.constant 0 : index
      %c0_15 = arith.constant 0 : index
      %23 = vector.load %arg6[%c0_14, %c0_15] : memref<16x128xf32, #tpu.memory_space<vmem>>, vector<16x128xf32>
      %c0_16 = arith.constant 0 : index
      %c0_17 = arith.constant 0 : index
      %24 = vector.load %arg5[%c0_16, %c0_17] : memref<16x128xf32, #tpu.memory_space<vmem>>, vector<16x128xf32>
      tpu.vector_store %arg5[%c0_16, %c0_17], %23 {strides = array<i32>} : memref<16x128xf32, #tpu.memory_space<vmem>>, vector<16x128xf32>,
    } else {
    }
    return
  }
  func.func @transform_0(%arg0: i32, %arg1: i32) -> (i32, i32) {
    %c0_i32 = arith.constant 0 : i32
    %c0_i32_0 = arith.constant 0 : i32
    return %arg0, %c0_i32 : i32, i32
  }
  func.func @transform_1(%arg0: i32, %arg1: i32) -> (i32, i32) {
    %c0_i32 = arith.constant 0 : i32
    %c0_i32_0 = arith.constant 0 : i32
    return %c0_i32, %arg1 : i32, i32
  }
  func.func @transform_2(%arg0: i32, %arg1: i32) -> (i32, i32) {
    %c0_i32 = arith.constant 0 : i32
    %c0_i32_0 = arith.constant 0 : i32
    return %arg1, %c0_i32 : i32, i32
  }
  func.func @transform_3(%arg0: i32, %arg1: i32) -> (i32, i32) {
    %c0_i32 = arith.constant 0 : i32
    %c0_i32_0 = arith.constant 0 : i32
    return %arg0, %c0_i32 : i32, i32
  }
}

</mosaic_0001>

<bundles_post_ra>
// kernel: feed_forward.1
= control target key start
LH: loop header
LB: loop body
LE: loop exit
PB: predicated region body
PF: predicated region fallthrough
CT: control target
= control target key end

     0   :  { %s1253_s0 = inlined_call_operand.vmem [shape: f32[16,128], index: 0, kind: input, shape index: {}]   ;;  %s1254_s1 = inlined_call_operand.vmem [shape: f32[128,768], index: 1, kind: input, shape index: {}]   ;;  %s1255_s2 = inlined_call_operand.vmem [shape: f32[384,128], index: 2, kind: input, shape index: {}]   ;;  %s1256_s3 = inlined_call_operand.hbm [shape: f32[16,128], index: 3, kind: output, shape index: {}]  }
   0x1   :  { %v114_v0 = vld [vmem:[%s1254_s1 + $0x2d8] sm:$0xff]  ;;  %v116_v1 = vld [vmem:[%s1254_s1 + $0x2e8] sm:$0xff]  ;;  %v113_v2 = vld [vmem:[%s1254_s1 + $0x2d0] sm:$0xff] }
   0x2   :  { %119 = vmatprep.subr.mxu0 %v114_v0  ;;  %196 = vmatprep.subr.mxu1 %v116_v1  ;;  %v115_v3 = vld [vmem:[%s1254_s1 + $0x2e0] sm:$0xff]  ;;  %v108_v4 = vld [vmem:[%s1254_s1 + $0x2a8] sm:$0xff]  ;;  %v110_v5 = vld [vmem:[%s1254_s1 + $0x2b8] sm:$0xff]  ;;  %v772_v1 = vmov 0.0  }
   0x3   :  { %120 = vmatpush1.msra.mxu0 %v113_v2  ;;  %197 = vmatpush1.msra.mxu1 %v115_v3  ;;  %v107_v6 = vld [vmem:[%s1254_s1 + $0x2a0] sm:$0xff]  ;;  %v109_v7 = vld [vmem:[%s1254_s1 + $0x2b0] sm:$0xff]  ;;  %v102_v8 = vld [vmem:[%s1254_s1 + $0x278] sm:$0xff] }
   0x4   :  { %121 = vmatprep.subr.mxu0 %v108_v4  ;;  %198 = vmatprep.subr.mxu1 %v110_v5  ;;  %v104_v9 = vld [vmem:[%s1254_s1 + $0x288] sm:$0xff]  ;;  %v101_v10 = vld [vmem:[%s1254_s1 + $0x270] sm:$0xff]  ;;  %v103_v11 = vld [vmem:[%s1254_s1 + $0x280] sm:$0xff] }
   0x5   :  { %122 = vmatpush1.msra.mxu0 %v107_v6  ;;  %199 = vmatpush1.msra.mxu1 %v109_v7  ;;  %v96_v12 = vld [vmem:[%s1254_s1 + $0x248] sm:$0xff]  ;;  %v98_v13 = vld [vmem:[%s1254_s1 + $0x258] sm:$0xff]  ;;  %v95_v14 = vld [vmem:[%s1254_s1 + $0x240] sm:$0xff] }
   0x6   :  { %123 = vmatprep.subr.mxu0 %v102_v8  ;;  %200 = vmatprep.subr.mxu1 %v104_v9  ;;  %v97_v15 = vld [vmem:[%s1254_s1 + $0x250] sm:$0xff]  ;;  %v90_v16 = vld [vmem:[%s1254_s1 + $0x218] sm:$0xff]  ;;  %v92_v17 = vld [vmem:[%s1254_s1 + $0x228] sm:$0xff] }
   0x7   :  { %124 = vmatpush1.msra.mxu0 %v101_v10  ;;  %201 = vmatpush1.msra.mxu1 %v103_v11  ;;  %v89_v18 = vld [vmem:[%s1254_s1 + $0x210] sm:$0xff]  ;;  %v91_v19 = vld [vmem:[%s1254_s1 + $0x220] sm:$0xff]  ;;  %v84_v20 = vld [vmem:[%s1254_s1 + $0x1e8] sm:$0xff] }
   0x8   :  { %125 = vmatprep.subr.mxu0 %v96_v12  ;;  %202 = vmatprep.subr.mxu1 %v98_v13  ;;  %v86_v21 = vld [vmem:[%s1254_s1 + $0x1f8] sm:$0xff]  ;;  %v83_v22 = vld [vmem:[%s1254_s1 + $0x1e0] sm:$0xff]  ;;  %v85_v23 = vld [vmem:[%s1254_s1 + $0x1f0] sm:$0xff] }
   0x9   :  { %126 = vmatpush1.msra.mxu0 %v95_v14  ;;  %203 = vmatpush1.msra.mxu1 %v97_v15  ;;  %v78_v24 = vld [vmem:[%s1254_s1 + $0x1b8] sm:$0xff]  ;;  %v80_v25 = vld [vmem:[%s1254_s1 + $0x1c8] sm:$0xff]  ;;  %v77_v26 = vld [vmem:[%s1254_s1 + $0x1b0] sm:$0xff] }
   0xa   :  { %127 = vmatprep.subr.mxu0 %v90_v16  ;;  %204 = vmatprep.subr.mxu1 %v92_v17  ;;  %v79_v27 = vld [vmem:[%s1254_s1 + $0x1c0] sm:$0xff]  ;;  %v72_v28 = vld [vmem:[%s1254_s1 + $0x188] sm:$0xff]  ;;  %v74_v29 = vld [vmem:[%s1254_s1 + $0x198] sm:$0xff] }
   0xb   :  { %128 = vmatpush1.msra.mxu0 %v89_v18  ;;  %205 = vmatpush1.msra.mxu1 %v91_v19  ;;  %v71_v30 = vld [vmem:[%s1254_s1 + $0x180] sm:$0xff]  ;;  %v73_v31 = vld [vmem:[%s1254_s1 + $0x190] sm:$0xff]  ;;  %v66_v32 = vld [vmem:[%s1254_s1 + $0x158] sm:$0xff] }
   0xc   :  { %129 = vmatprep.subr.mxu0 %v84_v20  ;;  %206 = vmatprep.subr.mxu1 %v86_v21  ;;  %v68_v33 = vld [vmem:[%s1254_s1 + $0x168] sm:$0xff]  ;;  %v65_v34 = vld [vmem:[%s1254_s1 + $0x150] sm:$0xff]  ;;  %v67_v35 = vld [vmem:[%s1254_s1 + $0x160] sm:$0xff] }
   0xd   :  { %130 = vmatpush1.msra.mxu0 %v83_v22  ;;  %207 = vmatpush1.msra.mxu1 %v85_v23  ;;  %v60_v36 = vld [vmem:[%s1254_s1 + $0x128] sm:$0xff]  ;;  %v62_v37 = vld [vmem:[%s1254_s1 + $0x138] sm:$0xff]  ;;  %v59_v38 = vld [vmem:[%s1254_s1 + $0x120] sm:$0xff] }
   0xe   :  { %131 = vmatprep.subr.mxu0 %v78_v24  ;;  %208 = vmatprep.subr.mxu1 %v80_v25  ;;  %v61_v39 = vld [vmem:[%s1254_s1 + $0x130] sm:$0xff]  ;;  %v54_v40 = vld [vmem:[%s1254_s1 + $0xf8] sm:$0xff]  ;;  %v56_v41 = vld [vmem:[%s1254_s1 + $0x108] sm:$0xff] }
   0xf   :  { %132 = vmatpush1.msra.mxu0 %v77_v26  ;;  %209 = vmatpush1.msra.mxu1 %v79_v27  ;;  %v53_v42 = vld [vmem:[%s1254_s1 + $0xf0] sm:$0xff]  ;;  %v55_v43 = vld [vmem:[%s1254_s1 + $0x100] sm:$0xff]  ;;  %v48_v44 = vld [vmem:[%s1254_s1 + $0xc8] sm:$0xff] }
  0x10   :  { %133 = vmatprep.subr.mxu0 %v72_v28  ;;  %210 = vmatprep.subr.mxu1 %v74_v29  ;;  %v50_v45 = vld [vmem:[%s1254_s1 + $0xd8] sm:$0xff]  ;;  %v47_v46 = vld [vmem:[%s1254_s1 + $0xc0] sm:$0xff]  ;;  %v49_v47 = vld [vmem:[%s1254_s1 + $0xd0] sm:$0xff] }
  0x11   :  { %134 = vmatpush1.msra.mxu0 %v71_v30  ;;  %211 = vmatpush1.msra.mxu1 %v73_v31  ;;  %v42_v48 = vld [vmem:[%s1254_s1 + $0x98] sm:$0xff]  ;;  %v44_v49 = vld [vmem:[%s1254_s1 + $0xa8] sm:$0xff]  ;;  %v41_v50 = vld [vmem:[%s1254_s1 + $0x90] sm:$0xff] }
  0x12   :  { %135 = vmatprep.subr.mxu0 %v66_v32  ;;  %212 = vmatprep.subr.mxu1 %v68_v33  ;;  %v43_v51 = vld [vmem:[%s1254_s1 + $0xa0] sm:$0xff]  ;;  %v36_v52 = vld [vmem:[%s1254_s1 + $0x68] sm:$0xff]  ;;  %v38_v53 = vld [vmem:[%s1254_s1 + $0x78] sm:$0xff] }
  0x13   :  { %136 = vmatpush1.msra.mxu0 %v65_v34  ;;  %213 = vmatpush1.msra.mxu1 %v67_v35  ;;  %v35_v54 = vld [vmem:[%s1254_s1 + $0x60] sm:$0xff]  ;;  %v37_v55 = vld [vmem:[%s1254_s1 + $0x70] sm:$0xff]  ;;  %v30_v56 = vld [vmem:[%s1254_s1 + $0x38] sm:$0xff] }
  0x14   :  { %137 = vmatprep.subr.mxu0 %v60_v36  ;;  %214 = vmatprep.subr.mxu1 %v62_v37  ;;  %v32_v57 = vld [vmem:[%s1254_s1 + $0x48] sm:$0xff]  ;;  %v29_v58 = vld [vmem:[%s1254_s1 + $0x30] sm:$0xff]  ;;  %v31_v59 = vld [vmem:[%s1254_s1 + $0x40] sm:$0xff] }
  0x15   :  { %138 = vmatpush1.msra.mxu0 %v59_v38  ;;  %215 = vmatpush1.msra.mxu1 %v61_v39  ;;  %v24_v60 = vld [vmem:[%s1254_s1 + $0x8] sm:$0xff]  ;;  %v26_v61 = vld [vmem:[%s1254_s1 + $0x18] sm:$0xff]  ;;  %v23_v62 = vld [vmem:[%s1254_s1] sm:$0xff] }
  0x16   :  { %139 = vmatprep.subr.mxu0 %v54_v40  ;;  %216 = vmatprep.subr.mxu1 %v56_v41  ;;  %v25_v63 = vld [vmem:[%s1254_s1 + $0x10] sm:$0xff]  ;;  %v991_v0 = vld [vmem:[%s1253_s0] sm:$0xff]  ;;  %v118_v2 = vld [vmem:[%s1254_s1 + $0x2f8] sm:$0xff] }
  0x17   :  { %140 = vmatpush1.msra.mxu0 %v53_v42  ;;  %217 = vmatpush1.msra.mxu1 %v55_v43 }
  0x18   :  { %141 = vmatprep.subr.mxu0 %v48_v44  ;;  %218 = vmatprep.subr.mxu1 %v50_v45 }
  0x19   :  { %142 = vmatpush1.msra.mxu0 %v47_v46  ;;  %219 = vmatpush1.msra.mxu1 %v49_v47 }
  0x1a   :  { %143 = vmatprep.subr.mxu0 %v42_v48  ;;  %220 = vmatprep.subr.mxu1 %v44_v49 }
  0x1b   :  { %144 = vmatpush1.msra.mxu0 %v41_v50  ;;  %221 = vmatpush1.msra.mxu1 %v43_v51 }
  0x1c   :  { %145 = vmatprep.subr.mxu0 %v36_v52  ;;  %222 = vmatprep.subr.mxu1 %v38_v53 }
  0x1d   :  { %146 = vmatpush1.msra.mxu0 %v35_v54  ;;  %223 = vmatpush1.msra.mxu1 %v37_v55 }
  0x1e   :  { %147 = vmatprep.subr.mxu0 %v30_v56  ;;  %224 = vmatprep.subr.mxu1 %v32_v57 }
  0x1f   :  { %148 = vmatpush1.msra.mxu0 %v29_v58  ;;  %225 = vmatpush1.msra.mxu1 %v31_v59 }
  0x20   :  { %149 = vmatprep.subr.mxu0 %v24_v60  ;;  %226 = vmatprep.subr.mxu1 %v26_v61 }
  0x21   :  { %150 = vmatpush1.msra.mxu0 %v23_v62  ;;  %183 = vmatprep.mubr.f32.mxu0 %v772_v1 }
  0x22   :  { %8 = vsyncpa [#allocation4], 0  ;;  %227 = vmatpush1.msra.mxu1 %v25_v63  ;;  %260 = vmatprep.mubr.f32.mxu1 %v772_v1  ;;  %v117_v3 = vld [vmem:[%s1254_s1 + $0x2f0] sm:$0xff]  ;;  %v112_v4 = vld [vmem:[%s1254_s1 + $0x2c8] sm:$0xff] }
  0x23   :  { %184 = vmatmul.mubr.f32.vlgmr.msra.gmra.mxu0 %v991_v0  ;;  %261 = vmatmul.mubr.f32.vlgmr.msra.gmra.mxu1 %v991_v0  ;;  %v111_v5 = vld [vmem:[%s1254_s1 + $0x2c0] sm:$0xff]  ;;  %v1013_v6 = vld [vmem:[%s1253_s0 + $0x8] sm:$0xff]  ;;  %v106_v7 = vld [vmem:[%s1254_s1 + $0x298] sm:$0xff] }
  0x24   :  { %273 = vmatprep.subr.mxu0 %v118_v2  ;;  %189 = vmatprep.mubr.f32.mxu0 %v772_v1  ;;  %v105_v8 = vld [vmem:[%s1254_s1 + $0x290] sm:$0xff]  ;;  %v100_v9 = vld [vmem:[%s1254_s1 + $0x268] sm:$0xff]  ;;  %v99_v10 = vld [vmem:[%s1254_s1 + $0x260] sm:$0xff] }
  0x25   :  { %274 = vmatpush1.msra.mxu0 %v117_v3  ;;  %266 = vmatprep.mubr.f32.mxu1 %v772_v1  ;;  %v94_v11 = vld [vmem:[%s1254_s1 + $0x238] sm:$0xff]  ;;  %v93_v12 = vld [vmem:[%s1254_s1 + $0x230] sm:$0xff]  ;;  %v88_v13 = vld [vmem:[%s1254_s1 + $0x208] sm:$0xff] }
  0x26   :  { %275 = vmatprep.subr.mxu0 %v112_v4  ;;  %v87_v14 = vld [vmem:[%s1254_s1 + $0x200] sm:$0xff]  ;;  %v82_v15 = vld [vmem:[%s1254_s1 + $0x1d8] sm:$0xff]  ;;  %v81_v16 = vld [vmem:[%s1254_s1 + $0x1d0] sm:$0xff] }
  0x27   :  { %276 = vmatpush1.msra.mxu0 %v111_v5  ;;  %267 = vmatmul.mubr.f32.gmra.mxu1 %v1013_v6  ;;  %v76_v17 = vld [vmem:[%s1254_s1 + $0x1a8] sm:$0xff]  ;;  %v75_v18 = vld [vmem:[%s1254_s1 + $0x1a0] sm:$0xff]  ;;  %v70_v19 = vld [vmem:[%s1254_s1 + $0x178] sm:$0xff] }
  0x28   :  { %190 = vmatmul.mubr.f32.gmra.mxu0 %v1013_v6  ;;  %277 = vmatprep.subr.mxu0 %v106_v7  ;;  %v69_v20 = vld [vmem:[%s1254_s1 + $0x170] sm:$0xff]  ;;  %v64_v21 = vld [vmem:[%s1254_s1 + $0x148] sm:$0xff]  ;;  %v63_v22 = vld [vmem:[%s1254_s1 + $0x140] sm:$0xff] }
  0x29   :  { %278 = vmatpush1.msra.mxu0 %v105_v8  ;;  %337 = vmatprep.mubr.f32.mxu0 %v772_v1  ;;  %v58_v23 = vld [vmem:[%s1254_s1 + $0x118] sm:$0xff]  ;;  %v57_v24 = vld [vmem:[%s1254_s1 + $0x110] sm:$0xff]  ;;  %v52_v25 = vld [vmem:[%s1254_s1 + $0xe8] sm:$0xff] }
  0x2a   :  { %279 = vmatprep.subr.mxu0 %v100_v9  ;;  %v51_v26 = vld [vmem:[%s1254_s1 + $0xe0] sm:$0xff]  ;;  %v46_v27 = vld [vmem:[%s1254_s1 + $0xb8] sm:$0xff]  ;;  %v45_v28 = vld [vmem:[%s1254_s1 + $0xb0] sm:$0xff] }
  0x2b   :  { %280 = vmatpush1.msra.mxu0 %v99_v10  ;;  %v40_v29 = vld [vmem:[%s1254_s1 + $0x88] sm:$0xff]  ;;  %v39_v30 = vld [vmem:[%s1254_s1 + $0x80] sm:$0xff]  ;;  %v34_v31 = vld [vmem:[%s1254_s1 + $0x58] sm:$0xff] }
  0x2c   :  { %281 = vmatprep.subr.mxu0 %v94_v11  ;;  %v33_v32 = vld [vmem:[%s1254_s1 + $0x50] sm:$0xff]  ;;  %v28_v33 = vld [vmem:[%s1254_s1 + $0x28] sm:$0xff]  ;;  %v27_v34 = vld [vmem:[%s1254_s1 + $0x20] sm:$0xff] }
  0x2d   :  { %282 = vmatpush1.msra.mxu0 %v93_v12  ;;  %v431_v35 = vld [vmem:[%s1255_s2 + $0xf8] sm:$0xff]  ;;  %v430_v38 = vld [vmem:[%s1255_s2 + $0xf0] sm:$0xff]  ;;  %v429_v41 = vld [vmem:[%s1255_s2 + $0xe8] sm:$0xff] }
  0x2e   :  { %283 = vmatprep.subr.mxu0 %v88_v13  ;;  %631 = vmatprep.subr.mxu1 %v431_v35  ;;  %v415_v36 = vld [vmem:[%s1255_s2 + $0x78] sm:$0xff]  ;;  %v414_v39 = vld [vmem:[%s1255_s2 + $0x70] sm:$0xff]  ;;  %v413_v42 = vld [vmem:[%s1255_s2 + $0x68] sm:$0xff] }
  0x2f   :  { %284 = vmatpush1.msra.mxu0 %v87_v14  ;;  %v447_v37 = vld [vmem:[%s1255_s2 + $0x178] sm:$0xff]  ;;  %632 = vmatpush3.msra.mxu1 %v415_v36  ;;  %v446_v40 = vld [vmem:[%s1255_s2 + $0x170] sm:$0xff]  ;;  %v445_v43 = vld [vmem:[%s1255_s2 + $0x168] sm:$0xff] }
  0x30   :  { %285 = vmatprep.subr.mxu0 %v82_v15  ;;  %633 = vmatprep.subr.mxu1 %v430_v38  ;;  %v428_v44 = vld [vmem:[%s1255_s2 + $0xe0] sm:$0xff]  ;;  %v427_v47 = vld [vmem:[%s1255_s2 + $0xd8] sm:$0xff]  ;;  %v426_v50 = vld [vmem:[%s1255_s2 + $0xd0] sm:$0xff] }
  0x31   :  { %286 = vmatpush1.msra.mxu0 %v81_v16  ;;  %634 = vmatpush3.msra.mxu1 %v414_v39  ;;  %v412_v45 = vld [vmem:[%s1255_s2 + $0x60] sm:$0xff]  ;;  %v411_v48 = vld [vmem:[%s1255_s2 + $0x58] sm:$0xff]  ;;  %v410_v51 = vld [vmem:[%s1255_s2 + $0x50] sm:$0xff] }
  0x32   :  { %287 = vmatprep.subr.mxu0 %v76_v17  ;;  %635 = vmatprep.subr.mxu1 %v429_v41  ;;  %v444_v46 = vld [vmem:[%s1255_s2 + $0x160] sm:$0xff]  ;;  %v443_v49 = vld [vmem:[%s1255_s2 + $0x158] sm:$0xff]  ;;  %v442_v52 = vld [vmem:[%s1255_s2 + $0x150] sm:$0xff] }
  0x33   :  { %288 = vmatpush1.msra.mxu0 %v75_v18  ;;  %636 = vmatpush3.msra.mxu1 %v413_v42  ;;  %v425_v53 = vld [vmem:[%s1255_s2 + $0xc8] sm:$0xff]  ;;  %v424_v56 = vld [vmem:[%s1255_s2 + $0xc0] sm:$0xff]  ;;  %v423_v59 = vld [vmem:[%s1255_s2 + $0xb8] sm:$0xff] }
  0x34   :  { %289 = vmatprep.subr.mxu0 %v70_v19  ;;  %637 = vmatprep.subr.mxu1 %v428_v44  ;;  %v409_v54 = vld [vmem:[%s1255_s2 + $0x48] sm:$0xff]  ;;  %v408_v57 = vld [vmem:[%s1255_s2 + $0x40] sm:$0xff]  ;;  %v407_v60 = vld [vmem:[%s1255_s2 + $0x38] sm:$0xff] }
  0x35   :  { %290 = vmatpush1.msra.mxu0 %v69_v20  ;;  %638 = vmatpush3.msra.mxu1 %v412_v45  ;;  %v441_v55 = vld [vmem:[%s1255_s2 + $0x148] sm:$0xff]  ;;  %v440_v58 = vld [vmem:[%s1255_s2 + $0x140] sm:$0xff]  ;;  %v439_v61 = vld [vmem:[%s1255_s2 + $0x138] sm:$0xff] }
  0x36   :  { %291 = vmatprep.subr.mxu0 %v64_v21  ;;  %639 = vmatprep.subr.mxu1 %v427_v47  ;;  %v422_v62 = vld [vmem:[%s1255_s2 + $0xb0] sm:$0xff]  ;;  %v405_v2 = vld [vmem:[%s1255_s2 + $0x28] sm:$0xff]  ;;  %v420_v4 = vld [vmem:[%s1255_s2 + $0xa0] sm:$0xff] }
  0x37   :  { %292 = vmatpush1.msra.mxu0 %v63_v22  ;;  %640 = vmatpush3.msra.mxu1 %v411_v48  ;;  %v406_v63 = vld [vmem:[%s1255_s2 + $0x30] sm:$0xff]  ;;  %v437_v3 = vld [vmem:[%s1255_s2 + $0x128] sm:$0xff]  ;;  %v404_v5 = vld [vmem:[%s1255_s2 + $0x20] sm:$0xff] }
  0x38   :  { %293 = vmatprep.subr.mxu0 %v58_v23  ;;  %641 = vmatprep.subr.mxu1 %v426_v50  ;;  %v419_v7 = vld [vmem:[%s1255_s2 + $0x98] sm:$0xff]  ;;  %v418_v10 = vld [vmem:[%s1255_s2 + $0x90] sm:$0xff]  ;;  %v417_v13 = vld [vmem:[%s1255_s2 + $0x88] sm:$0xff] }
  0x39   :  { %294 = vmatpush1.msra.mxu0 %v57_v24  ;;  %642 = vmatpush3.msra.mxu1 %v410_v51  ;;  %v403_v8 = vld [vmem:[%s1255_s2 + $0x18] sm:$0xff]  ;;  %v402_v11 = vld [vmem:[%s1255_s2 + $0x10] sm:$0xff]  ;;  %v401_v14 = vld [vmem:[%s1255_s2 + $0x8] sm:$0xff] }
  0x3a   :  { %295 = vmatprep.subr.mxu0 %v52_v25  ;;  %643 = vmatprep.subr.mxu1 %v425_v53  ;;  %v435_v9 = vld [vmem:[%s1255_s2 + $0x118] sm:$0xff]  ;;  %v434_v12 = vld [vmem:[%s1255_s2 + $0x110] sm:$0xff]  ;;  %v433_v15 = vld [vmem:[%s1255_s2 + $0x108] sm:$0xff] }
  0x3b   :  { %296 = vmatpush1.msra.mxu0 %v51_v26  ;;  %644 = vmatpush3.msra.mxu1 %v409_v54  ;;  %v416_v16 = vld [vmem:[%s1255_s2 + $0x80] sm:$0xff] }
  0x3c   :  { %297 = vmatprep.subr.mxu0 %v46_v27  ;;  %645 = vmatprep.subr.mxu1 %v424_v56  ;;  %v400_v17 = vld [vmem:[%s1255_s2] sm:$0xff] }
  0x3d   :  { %298 = vmatpush1.msra.mxu0 %v45_v28  ;;  %646 = vmatpush3.msra.mxu1 %v408_v57  ;;  %v432_v18 = vld [vmem:[%s1255_s2 + $0x100] sm:$0xff] }
  0x3e   :  { %299 = vmatprep.subr.mxu0 %v40_v29  ;;  %647 = vmatprep.subr.mxu1 %v423_v59 }
  0x3f   :  { %300 = vmatpush1.msra.mxu0 %v39_v30  ;;  %648 = vmatpush3.msra.mxu1 %v407_v60 }
  0x40   :  { %301 = vmatprep.subr.mxu0 %v34_v31  ;;  %649 = vmatprep.subr.mxu1 %v422_v62 }
  0x41   :  { %302 = vmatpush1.msra.mxu0 %v33_v32  ;;  %650 = vmatpush3.msra.mxu1 %v406_v63 }
  0x42   :  { %303 = vmatprep.subr.mxu0 %v28_v33 }
  0x43   :  { %304 = vmatpush1.msra.mxu0 %v27_v34 }
  0x44   :  { %338 = vmatmul.mubr.f32.vlgmr.msra.gmra.mxu0 %v991_v0  ;;  %687 = vmatprep.subr.mxu0 %v447_v37  ;;  %v438_v0 = vld [vmem:[%s1255_s2 + $0x130] sm:$0xff] }
  0x45   :  { %343 = vmatprep.mubr.f32.mxu0 %v772_v1  ;;  %688 = vmatpush3.msra.mxu0 %v447_v37  ;;  %v421_v1 = vld [vmem:[%s1255_s2 + $0xa8] sm:$0xff] }
  0x46   :  { %689 = vmatprep.subr.mxu0 %v446_v40  ;;  %651 = vmatprep.subr.mxu1 %v421_v1 }
  0x47   :  { %690 = vmatpush3.msra.mxu0 %v446_v40  ;;  %652 = vmatpush3.msra.mxu1 %v405_v2 }
  0x48   :  { %344 = vmatmul.mubr.f32.gmra.mxu0 %v1013_v6  ;;  %691 = vmatprep.subr.mxu0 %v445_v43  ;;  %v436_v6 = vld [vmem:[%s1255_s2 + $0x120] sm:$0xff]  ;;  %s773_s2 = smov [#allocation3]  }
  0x49   :  { %692 = vmatpush3.msra.mxu0 %v445_v43  ;;  %653 = vmatprep.subr.mxu1 %v420_v4  ;;  %s614_s24 = sshll.u32 %s773_s2, 4  ;;  %s615_s24 = int_to_ptr.vmem [resolvable:$true] %s614_s24 }
  0x4a   :  { %693 = vmatprep.subr.mxu0 %v444_v46  ;;  %654 = vmatpush3.msra.mxu1 %v404_v5  ;;  %s750_s25 = scalar_lea.vmem %s615_s24, 256  ;;  %p755_p1 = scmp.lt.s32.totalorder %s615_s24, %s615_s24 }
  0x4b   :  { %694 = vmatpush3.msra.mxu0 %v444_v46  ;;  %655 = vmatprep.subr.mxu1 %v419_v7  ;;  %p751_p0 = scmp.ne.s32.totalorder %s615_s24, %s750_s25  ;;  %p756_p2 = scmp.lt.s32.totalorder %s750_s25, %s750_s25 }
  0x4c   :  { %695 = vmatprep.subr.mxu0 %v443_v49  ;;  %656 = vmatpush3.msra.mxu1 %v403_v8 }
  0x4d   :  { %696 = vmatpush3.msra.mxu0 %v443_v49  ;;  %657 = vmatprep.subr.mxu1 %v418_v10  ;;  %p757_p3 = por %p756_p2, %p755_p1 }
  0x4e   :  { %697 = vmatprep.subr.mxu0 %v442_v52  ;;  %658 = vmatpush3.msra.mxu1 %v402_v11 }
  0x4f   :  { %698 = vmatpush3.msra.mxu0 %v442_v52  ;;  %659 = vmatprep.subr.mxu1 %v417_v13  ;;  %p758_p4 = pnand %p757_p3, %p751_p0 }
  0x50   :  { %699 = vmatprep.subr.mxu0 %v441_v55  ;;  %660 = vmatpush3.msra.mxu1 %v401_v14 }
  0x51   :  { %700 = vmatpush3.msra.mxu0 %v441_v55  ;;  %661 = vmatprep.subr.mxu1 %v416_v16 }
  0x52   :  { %701 = vmatprep.subr.mxu0 %v440_v58  ;;  %662 = vmatpush3.msra.mxu1 %v400_v17 }
  0x53   :  { %702 = vmatpush3.msra.mxu0 %v440_v58 }
  0x54   :  { %703 = vmatprep.subr.mxu0 %v439_v61 }
  0x55   :  { %704 = vmatpush3.msra.mxu0 %v439_v61 }
  0x56   :  { %705 = vmatprep.subr.mxu0 %v438_v0 }
  0x57   :  { %706 = vmatpush3.msra.mxu0 %v438_v0 }
  0x58   :  { %707 = vmatprep.subr.mxu0 %v437_v3 }
  0x59   :  { %708 = vmatpush3.msra.mxu0 %v437_v3 }
  0x5a   :  { %709 = vmatprep.subr.mxu0 %v436_v6 }
  0x5b   :  { %710 = vmatpush3.msra.mxu0 %v436_v6 }
  0x5c   :  { %711 = vmatprep.subr.mxu0 %v435_v9 }
  0x5d   :  { %712 = vmatpush3.msra.mxu0 %v435_v9 }
  0x5e   :  { %713 = vmatprep.subr.mxu0 %v434_v12 }
  0x5f   :  { %714 = vmatpush3.msra.mxu0 %v434_v12 }
  0x60   :  { %715 = vmatprep.subr.mxu0 %v433_v15 }
  0x61   :  { %716 = vmatpush3.msra.mxu0 %v433_v15 }
  0x62   :  { %717 = vmatprep.subr.mxu0 %v432_v18 }
  0x63   :  { %718 = vmatpush3.msra.mxu0 %v432_v18 }
  0xe3   :  { %v185_v19 = vpop.f32.mrf.mxu0  ;;  %v262_v20 = vpop.f32.mrf.mxu1 }
  0xe4   :  { %v625_v21 = vmul.f32 -1.442695, %v185_v19  ;;  %v627_v22 = vmul.f32 -1.442695, %v262_v20 }
  0xe5   :  { %v187_v23 = vpop.f32.mrf.mxu0  ;;  %v264_v24 = vpop.f32.mrf.mxu1 }
  0xe6   :  { %726 = vpow2.f32 %v625_v21  ;;  %v626_v25 = vmul.f32 -1.442695, %v187_v23 }
  0xe7   :  { %728 = vpow2.f32 %v627_v22  ;;  %v268_v26 = vpop.f32.mrf.mxu1 }
  0xe8   :  { %730 = vpow2.f32 %v626_v25  ;;  %v191_v27 = vpop.f32.mrf.mxu0  ;;  %v630_v28 = vmul.f32 -1.442695, %v268_v26 }
  0xe9   :  { %v628_v29 = vmul.f32 -1.442695, %v191_v27  ;;  %v270_v0 = vpop.f32.mrf.mxu1 }
  0xea   :  { %732 = vpow2.f32 %v630_v28  ;;  %v193_v30 = vpop.f32.mrf.mxu0 }
  0xeb   :  { %734 = vpow2.f32 %v628_v29  ;;  %v629_v31 = vmul.f32 -1.442695, %v193_v30 }
  0xed   :  { %736 = vpow2.f32 %v629_v31 }
  0xf3   :  { %v727_v32 = vpop.eup %726 }
  0xf4   :  { %v729_v33 = vpop.eup %728  ;;  %v368_v34 = vadd.f32 1.0, %v727_v32 }
  0xf5   :  { %v731_v35 = vpop.eup %730  ;;  %v370_v36 = vadd.f32 1.0, %v729_v33 }
  0xf6   :  { %738 = vrcp.f32 %v368_v34  ;;  %v369_v37 = vadd.f32 1.0, %v731_v35 }
  0xf7   :  { %v733_v38 = vpop.eup %732  ;;  %740 = vrcp.f32 %v370_v36 }
  0xf8   :  { %v735_v39 = vpop.eup %734  ;;  %742 = vrcp.f32 %v369_v37  ;;  %v373_v40 = vadd.f32 1.0, %v733_v38 }
  0xf9   :  { %v371_v41 = vadd.f32 1.0, %v735_v39 }
  0xfa   :  { %v737_v42 = vpop.eup %736  ;;  %744 = vrcp.f32 %v373_v40 }
  0xfb   :  { %746 = vrcp.f32 %v371_v41  ;;  %v372_v43 = vadd.f32 1.0, %v737_v42 }
  0xfd   :  { %748 = vrcp.f32 %v372_v43 }
 0x103   :  { %v739_v44 = vpop.eup %738 }
 0x104   :  { %v741_v45 = vpop.eup %740  ;;  %v339_v46 = vpop.f32.mrf.mxu0  ;;  %v386_v48 = vmul.f32 %v739_v44, %v185_v19 }
 0x105   :  { %v743_v47 = vpop.eup %742  ;;  %v388_v49 = vmul.f32 %v741_v45, %v262_v20 }
 0x106   :  { %v387_v50 = vmul.f32 %v743_v47, %v187_v23  ;;  %v341_v51 = vpop.f32.mrf.mxu0  ;;  %v392_v58 = vmul.f32 %v386_v48, %v264_v24 }
 0x107   :  { %v745_v52 = vpop.eup %744  ;;  %v394_v53 = vmul.f32 %v388_v49, %v341_v51 }
 0x108   :  { %v747_v54 = vpop.eup %746  ;;  %v391_v55 = vmul.f32 %v745_v52, %v268_v26  ;;  %v393_v56 = vmul.f32 %v387_v50, %v339_v46  ;;  %v345_v57 = vpop.f32.mrf.mxu0 }
 0x109   :  { %719 = vmatprep.mubr.f32.mxu0 %v394_v53  ;;  %v389_v60 = vmul.f32 %v747_v54, %v191_v27 }
 0x10a   :  { %v749_v59 = vpop.eup %748  ;;  %v347_v61 = vpop.f32.mrf.mxu0  ;;  %512 = vmatprep.mubr.f32.mxu1 %v393_v56 }
 0x10b   :  { %v390_v62 = vmul.f32 %v749_v59, %v193_v30  ;;  %v397_v63 = vmul.f32 %v391_v55, %v347_v61  ;;  %513 = vmatmul.mubr.f32.vlgmr.msra.gmra.mxu1 %v392_v58  ;;  %v395_v2 = vmul.f32 %v389_v60, %v270_v0 }
 0x10d   :  { %v396_v1 = vmul.f32 %v390_v62, %v345_v57  ;;  %720 = vmatmul.mubr.f32.vlgmr.msra.gmra.mxu0 %v397_v63 }
 0x10f   :  { %517 = vmatprep.mubr.f32.mxu1 %v396_v1 }
 0x110   :  { %518 = vmatmul.mubr.f32.gmra.mxu1 %v395_v2 }
 0x1cb   :  { %v663_v3 = vpop.f32.mrf.mxu1 }
 0x1cd   :  { %v721_v4 = vpop.f32.mrf.mxu0  ;;  %v664_v5 = vpop.f32.mrf.mxu1 }
 0x1ce   :  { %v665_v6 = vadd.f32 %v664_v5, %v663_v3 }
 0x1cf   :  { %v589_v7 = vpop.f32.mrf.mxu0 }
 0x1d0   :  { %v590_v8 = vadd.f32 %v665_v6, %v589_v7  ;;  %v666_v9 = vpop.f32.mrf.mxu1 }
 0x1d2   :  { %607 = vst [vmem:[#allocation3] sm:$0xff] %v590_v8  ;;  %v667_v10 = vpop.f32.mrf.mxu1 }
 0x1d3   :  { %v668_v11 = vadd.f32 %v667_v10, %v666_v9 }
 0x1d5   :  { %v595_v12 = vadd.f32 %v721_v4, %v668_v11 }
 0x1d7   :  { %608 = vst [vmem:[#allocation3 + $0x8] sm:$0xff] %v595_v12 }
 0x1d8   :  { %761 = shalt.err (!%p758_p4)
}
 0x1d9   :  { %s774_s26 = smov 128   ;;  %s775_s27 = smov 8  }
 0x1da   :  { %620 = dma.vmem_to_hbm [thread:$0]  %s615_s24, 256, %s1256_s3, [#allocation4], %s774_s26, %s774_s26, %s775_s27  }
 0x1db   :  { %770 = dma.done.wait [#allocation4], 256  }
 0x1dc   :  { %771 = vsyncadd [#allocation4], 4294967040 }
 0x1dd   :  { %624 = vsyncpa [#allocation4], 1 }

</bundles_post_ra>
